<compile_context>
chip_gen: v5e
topology: v5e:2x2
jax: 0.10.0
libtpu: 0.0.40
codegen_flags: <defaults>
</compile_context>

<pallas_src>
import jax
import jax.numpy as jnp
from jax.experimental import pallas as pl
from jax.experimental.pallas import tpu as pltpu

IN_DIM = 28 * 28   # 784
H1_DIM = 128
H2_DIM = 64
OUT_DIM = 10
LANE = 128
_TILE_CANDIDATES = (8192, 4096, 2048, 1024, 512, 256, 128)


def mlp_kernel(x_ref, w1_ref, b1_ref, w2_ref, b2_ref, w3_ref, b3_ref, o_ref):
    # x streamed in its native dtype (f32 or bf16); cast to bf16 for the MXU here
    # (in-kernel cast -> the f32 pixels cross HBM exactly once).
    x = x_ref[...].astype(jnp.bfloat16)

    # fc1 + ReLU  (bf16 x bf16 -> f32 accumulate on the MXU)
    h1 = jnp.dot(x, w1_ref[...], preferred_element_type=jnp.float32) + b1_ref[...]
    h1 = jnp.maximum(h1, 0.0)

    # (dropout -> identity in eval)

    # fc2 + ReLU
    h2 = jnp.dot(h1.astype(jnp.bfloat16), w2_ref[...],
                 preferred_element_type=jnp.float32) + b2_ref[...]
    h2 = jnp.maximum(h2, 0.0)

    # (dropout -> identity in eval)

    # fc3 + log_softmax over the last axis (all f32, numerically stable)
    logits = jnp.dot(h2.astype(jnp.bfloat16), w3_ref[...],
                     preferred_element_type=jnp.float32) + b3_ref[...]
    m = jnp.max(logits, axis=-1, keepdims=True)
    shifted = logits - m
    lse = jnp.log(jnp.sum(jnp.exp(shifted), axis=-1, keepdims=True))
    o_ref[...] = (shifted - lse).astype(o_ref.dtype)


def _round_up(n, m):
    return ((n + m - 1) // m) * m


def _vmem_capacity_bytes():
    try:
        return int(pltpu.get_tpu_info().vmem_capacity_bytes)
    except Exception:
        return 64 << 20   # conservative (v7x-sized) fallback


def _estimate_vmem_bytes(tb, x_itemsize):
    """Per-step VMEM footprint: double-buffered I/O tiles (output lane-padded to
    128), resident bf16 weights / f32 biases, and the f32 intermediates."""
    x_tiles = 2 * tb * IN_DIM * x_itemsize                     # 2x input tiles
    out_tiles = 2 * tb * LANE * 4                              # 2x output tiles, lane-padded
    weights = 2 * ((IN_DIM * H1_DIM + H1_DIM * H2_DIM + H2_DIM * OUT_DIM) * 2
                   + (H1_DIM + H2_DIM + LANE) * 4)
    interm = tb * (6 * LANE) * 4                               # h1/h2/logits/exp/... (lane-padded f32)
    return x_tiles + out_tiles + weights + interm


def _pick_tile(B, x_itemsize, vmem_cap):
    budget = int(0.6 * vmem_cap)
    tb = _TILE_CANDIDATES[-1]
    for cand in _TILE_CANDIDATES:
        if _estimate_vmem_bytes(cand, x_itemsize) <= budget:
            tb = cand
            break
    return min(tb, _round_up(B, 8))


def reseau_chiffres_forward(x, params, tile_b=None):
    """x: (B, 1, 28, 28) / (B, 28, 28) / (B, 784). Returns (B, 10) f32 log-probs."""
    w1, b1, w2, b2, w3, b3 = params

    x2d = x.reshape(-1, IN_DIM)
    if x2d.dtype not in (jnp.float32, jnp.bfloat16):
        x2d = x2d.astype(jnp.float32)
    B = x2d.shape[0]
    itemsize = jnp.dtype(x2d.dtype).itemsize

    vmem_cap = _vmem_capacity_bytes()
    if tile_b is None:
        tb = _pick_tile(B, itemsize, vmem_cap)
    else:
        tb = min(_round_up(int(tile_b), 8), _round_up(B, 8))

    num_blocks = pl.cdiv(B, tb)   # partial last block handled by Pallas (masked stores)

    # bf16 weights (streamed once, VMEM-resident), f32 biases.
    w1b = w1.astype(jnp.bfloat16)
    w2b = w2.astype(jnp.bfloat16)
    w3b = w3.astype(jnp.bfloat16)
    b1f = b1.astype(jnp.float32).reshape(1, H1_DIM)
    b2f = b2.astype(jnp.float32).reshape(1, H2_DIM)
    b3f = b3.astype(jnp.float32).reshape(1, OUT_DIM)

    x_spec = pl.BlockSpec((tb, IN_DIM), lambda i: (i, 0))
    out_spec = pl.BlockSpec((tb, OUT_DIM), lambda i: (i, 0))
    resident = lambda shape: pl.BlockSpec(shape, lambda i: (0, 0))  # noqa: E731

    est = _estimate_vmem_bytes(tb, itemsize)
    vmem_limit = min(int(1.5 * est) + (8 << 20), int(0.75 * vmem_cap))
    vmem_limit = max(vmem_limit, 16 << 20)

    out = pl.pallas_call(
        mlp_kernel,
        out_shape=jax.ShapeDtypeStruct((B, OUT_DIM), jnp.float32),
        grid=(num_blocks,),
        in_specs=[
            x_spec,
            resident((IN_DIM, H1_DIM)), resident((1, H1_DIM)),
            resident((H1_DIM, H2_DIM)), resident((1, H2_DIM)),
            resident((H2_DIM, OUT_DIM)), resident((1, OUT_DIM)),
        ],
        out_specs=out_spec,
        compiler_params=pltpu.CompilerParams(
            dimension_semantics=("parallel",),   # megacore sharding on v7x
            vmem_limit_bytes=vmem_limit,
        ),
    )(x2d, w1b, b1f, w2b, b2f, w3b, b3f)

    return out


def reference_forward(x, params):
    """Pure-JAX f32 reference matching the PyTorch forward (eval mode)."""
    w1, b1, w2, b2, w3, b3 = params
    x2d = x.reshape(-1, IN_DIM).astype(jnp.float32)
    h1 = jnp.maximum(x2d @ w1 + b1.reshape(1, -1), 0.0)
    h2 = jnp.maximum(h1 @ w2 + b2.reshape(1, -1), 0.0)
    logits = h2 @ w3 + b3.reshape(1, -1)
    return jax.nn.log_softmax(logits, axis=-1)


def init_params(key):
    """Deterministic init matching the nn.Linear shapes (stored transposed: (in, out))."""
    ks = jax.random.split(key, 6)

    def linear(kw, kb, fan_in, fan_out):
        bound = 1.0 / jnp.sqrt(fan_in)
        w = jax.random.uniform(kw, (fan_in, fan_out), jnp.float32, -bound, bound)
        b = jax.random.uniform(kb, (1, fan_out), jnp.float32, -bound, bound)
        return w, b

    w1, b1 = linear(ks[0], ks[1], IN_DIM, H1_DIM)
    w2, b2 = linear(ks[2], ks[3], H1_DIM, H2_DIM)
    w3, b3 = linear(ks[4], ks[5], H2_DIM, OUT_DIM)
    return (w1, b1, w2, b2, w3, b3)


if __name__ == "__main__":
    key = jax.random.PRNGKey(0)
    k_param, k_x = jax.random.split(key)

    params = init_params(k_param)

    # Small batch of "images": (B, 1, 28, 28), as the MNIST loader would give.
    x = jax.random.normal(k_x, (8, 1, 28, 28), dtype=jnp.float32)
    log_probs = jax.block_until_ready(reseau_chiffres_forward(x, params))

    # Sanity: shape, row sums (exp(log_softmax) sums to 1), and agreement with
    # the f32 reference within bf16-matmul tolerance.
    assert log_probs.shape == (8, 10)
    row_sums = jnp.exp(log_probs).sum(axis=-1)
    assert bool(jnp.all(jnp.abs(row_sums - 1.0) < 1e-3))
    ref = reference_forward(x, params)
    assert bool(jnp.max(jnp.abs(log_probs - ref)) < 0.1)

    # Exercise the multi-block grid + partial-last-block path (B=20, tile 16).
    x2 = jax.random.normal(k_x, (20, 1, 28, 28), dtype=jnp.float32)
    log_probs2 = jax.block_until_ready(reseau_chiffres_forward(x2, params, tile_b=16))
    assert log_probs2.shape == (20, 10)
    row_sums2 = jnp.exp(log_probs2).sum(axis=-1)
    assert bool(jnp.all(jnp.abs(row_sums2 - 1.0) < 1e-3))
    ref2 = reference_forward(x2, params)
    assert bool(jnp.max(jnp.abs(log_probs2 - ref2)) < 0.1)

    print("KERNEL_OK")
</pallas_src>

<mosaic_0001>
module attributes {stable_mosaic.version = 11 : i64} {
  func.func @mlp_kernel(%arg0: i32, %arg1: memref<8x784xf32, #tpu.memory_space<vmem>>, %arg2: memref<784x128xbf16, #tpu.memory_space<vmem>>, %arg3: memref<1x128xf32, #tpu.memory_space<vmem>>, %arg4: memref<128x64xbf16, #tpu.memory_space<vmem>>, %arg5: memref<1x64xf32, #tpu.memory_space<vmem>>, %arg6: memref<64x10xbf16, #tpu.memory_space<vmem>>, %arg7: memref<1x10xf32, #tpu.memory_space<vmem>>, %arg8: memref<8x10xf32, #tpu.memory_space<vmem>>) attributes {dimension_semantics = [#tpu.dimension_semantics<parallel>], iteration_bounds = array<i64: 1>, scalar_prefetch = 0 : i64, scratch_operands = 0 : i64, tpu.core_type = #tpu.core_type<tc>, window_params = [{transform_indices = @transform_0, window_bounds = array<i64: 8, 784>}, {pipeline_mode = #tpu.pipeline_mode<synchronous>, transform_indices = @transform_1, window_bounds = array<i64: 784, 128>}, {pipeline_mode = #tpu.pipeline_mode<synchronous>, transform_indices = @transform_2, window_bounds = array<i64: 1, 128>}, {pipeline_mode = #tpu.pipeline_mode<synchronous>, transform_indices = @transform_3, window_bounds = array<i64: 128, 64>}, {pipeline_mode = #tpu.pipeline_mode<synchronous>, transform_indices = @transform_4, window_bounds = array<i64: 1, 64>}, {pipeline_mode = #tpu.pipeline_mode<synchronous>, transform_indices = @transform_5, window_bounds = array<i64: 64, 10>}, {pipeline_mode = #tpu.pipeline_mode<synchronous>, transform_indices = @transform_6, window_bounds = array<i64: 1, 10>}, {transform_indices = @transform_7, window_bounds = array<i64: 8, 10>}]} {
    %c0 = arith.constant 0 : index
    %c0_0 = arith.constant 0 : index
    %0 = vector.load %arg1[%c0, %c0_0] : memref<8x784xf32, #tpu.memory_space<vmem>>, vector<8x784xf32>
    %1 = arith.truncf %0 : vector<8x784xf32> to vector<8x784xbf16>
    %c0_1 = arith.constant 0 : index
    %c0_2 = arith.constant 0 : index
    %2 = vector.load %arg2[%c0_1, %c0_2] : memref<784x128xbf16, #tpu.memory_space<vmem>>, vector<784x128xbf16>
    %cst = arith.constant dense<0.000000e+00> : vector<8x128xf32>
    %3 = tpu.matmul %1, %2, %cst {dimension_numbers = #tpu.dot_dimension_numbers<[1], [0], [0], [1], [0, 0, 1, 1], [], []>} : vector<8x784xbf16>, vector<784x128xbf16>, vector<8x128xf32> -> vector<8x128xf32>
    %c0_3 = arith.constant 0 : index
    %c0_4 = arith.constant 0 : index
    %4 = vector.load %arg3[%c0_3, %c0_4] : memref<1x128xf32, #tpu.memory_space<vmem>>, vector<1x128xf32>
    %5 = vector.broadcast %4 : vector<1x128xf32> to vector<8x128xf32>
    %6 = arith.addf %3, %5 : vector<8x128xf32>
    %cst_5 = arith.constant 0.000000e+00 : f32
    %7 = vector.broadcast %cst_5 : f32 to vector<8x128xf32>
    %8 = arith.maximumf %6, %7 : vector<8x128xf32>
    %9 = arith.truncf %8 : vector<8x128xf32> to vector<8x128xbf16>
    %c0_6 = arith.constant 0 : index
    %c0_7 = arith.constant 0 : index
    %10 = vector.load %arg4[%c0_6, %c0_7] : memref<128x64xbf16, #tpu.memory_space<vmem>>, vector<128x64xbf16>
    %cst_8 = arith.constant dense<0.000000e+00> : vector<8x64xf32>
    %11 = tpu.matmul %9, %10, %cst_8 {dimension_numbers = #tpu.dot_dimension_numbers<[1], [0], [0], [1], [0, 0, 1, 1], [], []>} : vector<8x128xbf16>, vector<128x64xbf16>, vector<8x64xf32> -> vector<8x64xf32>
    %c0_9 = arith.constant 0 : index
    %c0_10 = arith.constant 0 : index
    %12 = vector.load %arg5[%c0_9, %c0_10] : memref<1x64xf32, #tpu.memory_space<vmem>>, vector<1x64xf32>
    %13 = vector.broadcast %12 : vector<1x64xf32> to vector<8x64xf32>
    %14 = arith.addf %11, %13 : vector<8x64xf32>
    %cst_11 = arith.constant 0.000000e+00 : f32
    %15 = vector.broadcast %cst_11 : f32 to vector<8x64xf32>
    %16 = arith.maximumf %14, %15 : vector<8x64xf32>
    %17 = arith.truncf %16 : vector<8x64xf32> to vector<8x64xbf16>
    %c0_12 = arith.constant 0 : index
    %c0_13 = arith.constant 0 : index
    %18 = vector.load %arg6[%c0_12, %c0_13] : memref<64x10xbf16, #tpu.memory_space<vmem>>, vector<64x10xbf16>
    %cst_14 = arith.constant dense<0.000000e+00> : vector<8x10xf32>
    %19 = tpu.matmul %17, %18, %cst_14 {dimension_numbers = #tpu.dot_dimension_numbers<[1], [0], [0], [1], [0, 0, 1, 1], [], []>} : vector<8x64xbf16>, vector<64x10xbf16>, vector<8x10xf32> -> vector<8x10xf32>
    %c0_15 = arith.constant 0 : index
    %c0_16 = arith.constant 0 : index
    %20 = vector.load %arg7[%c0_15, %c0_16] : memref<1x10xf32, #tpu.memory_space<vmem>>, vector<1x10xf32>
    %21 = vector.broadcast %20 : vector<1x10xf32> to vector<8x10xf32>
    %22 = arith.addf %19, %21 : vector<8x10xf32>
    %cst_17 = arith.constant dense<0xFF800000> : vector<8xf32>
    %23 = vector.multi_reduction <maximumf>, %22, %cst_17 [1] : vector<8x10xf32> to vector<8xf32>
    %24 = vector.shape_cast %23 : vector<8xf32> to vector<8x1xf32>
    %25 = vector.broadcast %24 : vector<8x1xf32> to vector<8x10xf32>
    %26 = arith.subf %22, %25 : vector<8x10xf32>
    %27 = math.exp %26 : vector<8x10xf32>
    %cst_18 = arith.constant dense<0.000000e+00> : vector<8xf32>
    %28 = vector.multi_reduction <add>, %27, %cst_18 [1] : vector<8x10xf32> to vector<8xf32>
    %29 = vector.shape_cast %28 : vector<8xf32> to vector<8x1xf32>
    %30 = math.log %29 : vector<8x1xf32>
    %31 = vector.broadcast %30 : vector<8x1xf32> to vector<8x10xf32>
    %32 = arith.subf %26, %31 : vector<8x10xf32>
    %c0_19 = arith.constant 0 : index
    %c0_20 = arith.constant 0 : index
    %33 = vector.load %arg8[%c0_19, %c0_20] : memref<8x10xf32, #tpu.memory_space<vmem>>, vector<8x10xf32>
    tpu.vector_store %arg8[%c0_19, %c0_20], %32 {strides = array<i32>} : memref<8x10xf32, #tpu.memory_space<vmem>>, vector<8x10xf32>,
    return
  }
  func.func @transform_0(%arg0: i32) -> (i32, i32) {
    %c0_i32 = arith.constant 0 : i32
    %c0_i32_0 = arith.constant 0 : i32
    return %arg0, %c0_i32 : i32, i32
  }
  func.func @transform_1(%arg0: i32) -> (i32, i32) {
    %c0_i32 = arith.constant 0 : i32
    %c0_i32_0 = arith.constant 0 : i32
    %c0_i32_1 = arith.constant 0 : i32
    return %c0_i32, %c0_i32_0 : i32, i32
  }
  func.func @transform_2(%arg0: i32) -> (i32, i32) {
    %c0_i32 = arith.constant 0 : i32
    %c0_i32_0 = arith.constant 0 : i32
    %c0_i32_1 = arith.constant 0 : i32
    return %c0_i32, %c0_i32_0 : i32, i32
  }
  func.func @transform_3(%arg0: i32) -> (i32, i32) {
    %c0_i32 = arith.constant 0 : i32
    %c0_i32_0 = arith.constant 0 : i32
    %c0_i32_1 = arith.constant 0 : i32
    return %c0_i32, %c0_i32_0 : i32, i32
  }
  func.func @transform_4(%arg0: i32) -> (i32, i32) {
    %c0_i32 = arith.constant 0 : i32
    %c0_i32_0 = arith.constant 0 : i32
    %c0_i32_1 = arith.constant 0 : i32
    return %c0_i32, %c0_i32_0 : i32, i32
  }
  func.func @transform_5(%arg0: i32) -> (i32, i32) {
    %c0_i32 = arith.constant 0 : i32
    %c0_i32_0 = arith.constant 0 : i32
    %c0_i32_1 = arith.constant 0 : i32
    return %c0_i32, %c0_i32_0 : i32, i32
  }
  func.func @transform_6(%arg0: i32) -> (i32, i32) {
    %c0_i32 = arith.constant 0 : i32
    %c0_i32_0 = arith.constant 0 : i32
    %c0_i32_1 = arith.constant 0 : i32
    return %c0_i32, %c0_i32_0 : i32, i32
  }
  func.func @transform_7(%arg0: i32) -> (i32, i32) {
    %c0_i32 = arith.constant 0 : i32
    %c0_i32_0 = arith.constant 0 : i32
    return %arg0, %c0_i32 : i32, i32
  }
}

</mosaic_0001>

<bundles_post_ra>
// kernel: tpu_custom_call.1
= control target key start
LH: loop header
LB: loop body
LE: loop exit
PB: predicated region body
PF: predicated region fallthrough
CT: control target
= control target key end

     0   :  { %12 = vsyncpa [#allocation3], 0  ;;  %s1207_s0 = inlined_call_operand.vmem [shape: f32[8,784], index: 0, kind: input, shape index: {}]   ;;  %s1208_s1 = inlined_call_operand.hbm [shape: bf16[784,128], index: 1, kind: input, shape index: {}]   ;;  %s1209_s2 = inlined_call_operand.vmem [shape: f32[1,128], index: 2, kind: input, shape index: {}]   ;;  %s1210_s3 = inlined_call_operand.vmem [shape: bf16[128,64], index: 3, kind: input, shape index: {}]   ;;  %s1211_s4 = inlined_call_operand.vmem [shape: f32[1,64], index: 4, kind: input, shape index: {}]   ;;  %s1212_s5 = inlined_call_operand.vmem [shape: bf16[64,10], index: 5, kind: input, shape index: {}]   ;;  %s1213_s6 = inlined_call_operand.vmem [shape: f32[1,10], index: 6, kind: input, shape index: {}]   ;;  %s1214_s7 = inlined_call_operand.hbm [shape: f32[8,10], index: 7, kind: output, shape index: {}]  }
   0x1   :  { %13 = vsyncpa [#allocation4], 0  ;;  %s20_s26 = sshll.u32 %s1208_s1, 4  ;;  %s1088_s27 = smov [#allocation2]   ;;  %s21_s26 = int_to_ptr.hbm [resolvable:$true] %s20_s26 }
   0x2   :  { %s22_s28 = sshll.u32 %s1088_s27, 4  ;;  %s1089_s29 = smov 64   ;;  %s23_s28 = int_to_ptr.vmem [resolvable:$true] %s22_s28 }
   0x3   :  { %s1090_s30 = smov 4  }
   0x4   :  { %28 = dma.hbm_to_vmem [thread:$0]  %s21_s26, 6272, %s23_s28, [#allocation3], %s1089_s29, %s1089_s29, %s1090_s30  }
   0x5   :  { %1084 = dma.done.wait [#allocation3], 6272  }
   0x6   :  { %1085 = vsyncadd [#allocation3], 4294961024  ;;  %v971_v0 = vld [vmem:[#allocation2 + $0x38] sm:$0xff]  ;;  %v970_v3 = vld [vmem:[#allocation2 + $0x30] sm:$0xff]  ;;  %vm454_vm0 = vcmask 130048   ;;  %vm670_vm1 = vcmask 523264  }
   0x7   :  { %v979_v1 = vld [vmem:[#allocation2 + $0x78] sm:$0xff]  ;;  %458 = vmatpush.bf16.msra.mxu0 %v971_v0  ;;  %v978_v4 = vld [vmem:[#allocation2 + $0x70] sm:$0xff]  ;;  %v969_v8 = vld [vmem:[#allocation2 + $0x28] sm:$0xff]  ;;  %vm687_vm2 = vcmask 80896   ;;  %s708_s25 = sshll.u32 %s1214_s7, 4  ;;  %s709_s25 = int_to_ptr.hbm [resolvable:$true] %s708_s25 }
   0x8   :  { %v987_v2 = vld [vmem:[#allocation2 + $0xb8] sm:$0xff]  ;;  %471 = vmatpush.bf16.msra.mxu1 %v979_v1  ;;  %v986_v5 = vld [vmem:[#allocation2 + $0xb0] sm:$0xff]  ;;  %v977_v9 = vld [vmem:[#allocation2 + $0x68] sm:$0xff] }
   0x9   :  { %484 = vmatpush.bf16.msra.mxu2 %v987_v2  ;;  %v995_v6 = vld [vmem:[#allocation2 + $0xf8] sm:$0xff]  ;;  %v994_v7 = vld [vmem:[#allocation2 + $0xf0] sm:$0xff]  ;;  %v985_v10 = vld [vmem:[#allocation2 + $0xa8] sm:$0xff] }
   0xa   :  { %497 = vmatpush.bf16.msra.mxu3 %v995_v6  ;;  %v993_v11 = vld [vmem:[#allocation2 + $0xe8] sm:$0xff]  ;;  %v968_v12 = vld [vmem:[#allocation2 + $0x20] sm:$0xff]  ;;  %v967_v16 = vld [vmem:[#allocation2 + $0x18] sm:$0xff] }
   0xb   :  { %459 = vmatpush.bf16.msra.mxu0 %v970_v3  ;;  %v976_v13 = vld [vmem:[#allocation2 + $0x60] sm:$0xff]  ;;  %v975_v17 = vld [vmem:[#allocation2 + $0x58] sm:$0xff]  ;;  %v966_v20 = vld [vmem:[#allocation2 + $0x10] sm:$0xff] }
   0xc   :  { %472 = vmatpush.bf16.msra.mxu1 %v978_v4  ;;  %v984_v14 = vld [vmem:[#allocation2 + $0xa0] sm:$0xff]  ;;  %v983_v18 = vld [vmem:[#allocation2 + $0x98] sm:$0xff]  ;;  %v974_v21 = vld [vmem:[#allocation2 + $0x50] sm:$0xff] }
   0xd   :  { %485 = vmatpush.bf16.msra.mxu2 %v986_v5  ;;  %v992_v15 = vld [vmem:[#allocation2 + $0xe0] sm:$0xff]  ;;  %v991_v19 = vld [vmem:[#allocation2 + $0xd8] sm:$0xff]  ;;  %v982_v22 = vld [vmem:[#allocation2 + $0x90] sm:$0xff] }
   0xe   :  { %498 = vmatpush.bf16.msra.mxu3 %v994_v7  ;;  %v990_v23 = vld [vmem:[#allocation2 + $0xd0] sm:$0xff]  ;;  %v965_v24 = vld [vmem:[#allocation2 + $0x8] sm:$0xff]  ;;  %v964_v27 = vld [vmem:[#allocation2] sm:$0xff] }
   0xf   :  { %460 = vmatpush.bf16.msra.mxu0 %v969_v8  ;;  %v973_v25 = vld [vmem:[#allocation2 + $0x48] sm:$0xff]  ;;  %v972_v29 = vld [vmem:[#allocation2 + $0x40] sm:$0xff]  ;;  %v1003_v32 = vld [vmem:[#allocation2 + $0x138] sm:$0xff] }
  0x10   :  { %473 = vmatpush.bf16.msra.mxu1 %v977_v9  ;;  %v981_v26 = vld [vmem:[#allocation2 + $0x88] sm:$0xff]  ;;  %v44_v30 = vld [vmem:[%s1207_s0] sm:$0xff]  ;;  %v1011_v33 = vld [vmem:[#allocation2 + $0x178] sm:$0xff] }
  0x11   :  { %486 = vmatpush.bf16.msra.mxu2 %v985_v10  ;;  %v989_v28 = vld [vmem:[#allocation2 + $0xc8] sm:$0xff]  ;;  %v980_v34 = vld [vmem:[#allocation2 + $0x80] sm:$0xff]  ;;  %v46_v35 = vld [vmem:[%s1207_s0 + $0x10] sm:$0xff]  ;;  %v51_v36 = vpack.c.bf16 %v44_v30, %v44_v30 }
  0x12   :  { %499 = vmatpush.bf16.msra.mxu3 %v993_v11  ;;  %v45_v31 = vld [vmem:[%s1207_s0 + $0x8] sm:$0xff]  ;;  %v988_v38 = vld [vmem:[#allocation2 + $0xc0] sm:$0xff]  ;;  %v47_v40 = vld [vmem:[%s1207_s0 + $0x18] sm:$0xff]  ;;  %v53_v43 = vpack.c.bf16 %v46_v35, %v46_v35 }
  0x13   :  { %461 = vmatpush.bf16.msra.mxu0 %v968_v12  ;;  %v52_v37 = vpack.c.bf16 %v45_v31, %v45_v31  ;;  %v1012_v39 = vld [vmem:[#allocation2 + $0x180] sm:$0xff]  ;;  %v1002_v41 = vld [vmem:[#allocation2 + $0x130] sm:$0xff]  ;;  %v54_v44 = vpack.c.bf16 %v47_v40, %v47_v40  ;;  %v1001_v45 = vld [vmem:[#allocation2 + $0x128] sm:$0xff] }
  0x14   :  { %474 = vmatpush.bf16.msra.mxu1 %v976_v13  ;;  %v1010_v42 = vld [vmem:[#allocation2 + $0x170] sm:$0xff]  ;;  %v1009_v46 = vld [vmem:[#allocation2 + $0x168] sm:$0xff]  ;;  %v1000_v47 = vld [vmem:[#allocation2 + $0x120] sm:$0xff] }
  0x15   :  { %487 = vmatpush.bf16.msra.mxu2 %v984_v14  ;;  %v1008_v48 = vld [vmem:[#allocation2 + $0x160] sm:$0xff]  ;;  %v999_v49 = vld [vmem:[#allocation2 + $0x118] sm:$0xff]  ;;  %v50_v51 = vld [vmem:[%s1207_s0 + $0x30] sm:$0xff] }
  0x16   :  { %500 = vmatpush.bf16.msra.mxu3 %v992_v15  ;;  %v1007_v50 = vld [vmem:[#allocation2 + $0x158] sm:$0xff]  ;;  %v998_v52 = vld [vmem:[#allocation2 + $0x110] sm:$0xff]  ;;  %v57_v54 = vpack.c.bf16 %v50_v51, %v50_v51  ;;  %v997_v55 = vld [vmem:[#allocation2 + $0x108] sm:$0xff] }
  0x17   :  { %462 = vmatpush.bf16.msra.mxu0 %v967_v16  ;;  %v1006_v53 = vld [vmem:[#allocation2 + $0x150] sm:$0xff]  ;;  %v1005_v56 = vld [vmem:[#allocation2 + $0x148] sm:$0xff]  ;;  %v996_v57 = vld [vmem:[#allocation2 + $0x100] sm:$0xff] }
  0x18   :  { %475 = vmatpush.bf16.msra.mxu1 %v975_v17  ;;  %v1004_v58 = vld [vmem:[#allocation2 + $0x140] sm:$0xff]  ;;  %v49_v60 = vld [vmem:[%s1207_s0 + $0x28] sm:$0xff]  ;;  %v1020_v63 = vld [vmem:[%s1210_s3 + $0x38] sm:$0xff] }
  0x19   :  { %488 = vmatpush.bf16.msra.mxu2 %v983_v18  ;;  %v48_v59 = vld [vmem:[%s1207_s0 + $0x20] sm:$0xff]  ;;  %v56_v62 = vpack.c.bf16 %v49_v60, %v49_v60  ;;  %v1019_v0 = vld [vmem:[%s1210_s3 + $0x30] sm:$0xff]  ;;  %v1018_v1 = vld [vmem:[%s1210_s3 + $0x28] sm:$0xff] }
  0x1a   :  { %501 = vmatpush.bf16.msra.mxu3 %v991_v19  ;;  %v55_v61 = vpack.c.bf16 %v48_v59, %v48_v59  ;;  %v1017_v2 = vld [vmem:[%s1210_s3 + $0x20] sm:$0xff]  ;;  %v1016_v3 = vld [vmem:[%s1210_s3 + $0x18] sm:$0xff]  ;;  %v1015_v4 = vld [vmem:[%s1210_s3 + $0x10] sm:$0xff] }
  0x1b   :  { %463 = vmatpush.bf16.msra.mxu0 %v966_v20  ;;  %v1014_v5 = vld [vmem:[%s1210_s3 + $0x8] sm:$0xff]  ;;  %v1013_v8 = vld [vmem:[%s1210_s3] sm:$0xff]  ;;  %v1024_v11 = vld [vmem:[%s1212_s5 + $0x18] sm:$0xff] }
  0x1c   :  { %476 = vmatpush.bf16.msra.mxu1 %v974_v21  ;;  %v1023_v14 = vld [vmem:[%s1212_s5 + $0x10] sm:$0xff]  ;;  %v1029_v15 = vld [vmem:[%s1209_s2] ss:$0 sm:$0xff]  ;;  %v1022_v16 = vld [vmem:[%s1212_s5 + $0x8] sm:$0xff] }
  0x1d   :  { %489 = vmatpush.bf16.msra.mxu2 %v982_v22  ;;  %v1030_v35 = vld [vmem:[%s1211_s4] ss:$0 sm:$0xff]  ;;  %s1091_s4 = smov [#allocation5]  }
  0x1e   :  { %502 = vmatpush.bf16.msra.mxu3 %v990_v23 }
  0x1f   :  { %464 = vmatpush.bf16.msra.mxu0 %v965_v24 }
  0x20   :  { %477 = vmatpush.bf16.msra.mxu1 %v973_v25 }
  0x21   :  { %490 = vmatpush.bf16.msra.mxu2 %v981_v26 }
  0x22   :  { %503 = vmatpush.bf16.msra.mxu3 %v989_v28 }
  0x23   :  { %465 = vmatpush.bf16.msra.mxu0 %v964_v27 }
  0x24   :  { %478 = vmatpush.bf16.msra.mxu1 %v972_v29 }
  0x25   :  { %491 = vmatpush.bf16.msra.mxu2 %v980_v34  ;;  %v1021_v34 = vld [vmem:[%s1212_s5] sm:$0xff]  ;;  %s706_s5 = sshll.u32 %s1091_s4, 4  ;;  %s707_s5 = int_to_ptr.vmem [resolvable:$true] %s706_s5 }
  0x26   :  { %466 = vmatmul.bf16.vlgmr.msra.gmra.mxu0 %v51_v36  ;;  %504 = vmatpush.bf16.msra.mxu3 %v988_v38 }
  0x27   :  { %510 = vmatpush.bf16.msrb.mxu0 %v1003_v32  ;;  %479 = vmatmul.bf16.vlgmr.msra.gmra.mxu1 %v52_v37 }
  0x28   :  { %523 = vmatpush.bf16.msrb.mxu1 %v1011_v33  ;;  %492 = vmatmul.bf16.vlgmr.msra.gmra.mxu2 %v53_v43 }
  0x29   :  { %543 = vmatpush.bf16.msrb.mxu2 %v1012_v39  ;;  %505 = vmatmul.bf16.vlgmr.msra.gmra.mxu3 %v54_v44 }
  0x2a   :  { %619 = vmatpush.bf16.msrb.mxu3 %v1020_v63 }
  0x2b   :  { %511 = vmatpush.bf16.msrb.mxu0 %v1002_v41  ;;  %v1031_v41 = vld [vmem:[%s1213_s6] ss:$0 sm:$0xff] }
  0x2c   :  { %524 = vmatpush.bf16.msrb.mxu1 %v1010_v42 }
  0x2d   :  { %678 = vmatpush.bf16.msra.mxu2 %v1024_v11 }
  0x2e   :  { %620 = vmatpush.bf16.msrb.mxu3 %v1019_v0 }
  0x2f   :  { %512 = vmatpush.bf16.msrb.mxu0 %v1001_v45 }
  0x30   :  { %525 = vmatpush.bf16.msrb.mxu1 %v1009_v46 }
  0x31   :  { %679 = vmatpush.bf16.msra.mxu2 %v1023_v14 }
  0x32   :  { %621 = vmatpush.bf16.msrb.mxu3 %v1018_v1 }
  0x33   :  { %513 = vmatpush.bf16.msrb.mxu0 %v1000_v47 }
  0x34   :  { %526 = vmatpush.bf16.msrb.mxu1 %v1008_v48 }
  0x35   :  { %680 = vmatpush.bf16.msra.mxu2 %v1022_v16 }
  0x36   :  { %622 = vmatpush.bf16.msrb.mxu3 %v1017_v2 }
  0x37   :  { %514 = vmatpush.bf16.msrb.mxu0 %v999_v49 }
  0x38   :  { %527 = vmatpush.bf16.msrb.mxu1 %v1007_v50  ;;  %914 = vmatmul.msk.bf16.vlgmr.msrb.gmra.mxu2 %vm454_vm0, %v57_v54 }
  0x39   :  { %681 = vmatpush.bf16.msra.mxu2 %v1021_v34 }
  0x3a   :  { %623 = vmatpush.bf16.msrb.mxu3 %v1016_v3 }
  0x3b   :  { %515 = vmatpush.bf16.msrb.mxu0 %v998_v52 }
  0x3c   :  { %528 = vmatpush.bf16.msrb.mxu1 %v1006_v53 }
  0x3e   :  { %624 = vmatpush.bf16.msrb.mxu3 %v1015_v4 }
  0x3f   :  { %516 = vmatpush.bf16.msrb.mxu0 %v997_v55 }
  0x40   :  { %529 = vmatpush.bf16.msrb.mxu1 %v1005_v56 }
  0x42   :  { %625 = vmatpush.bf16.msrb.mxu3 %v1014_v5 }
  0x43   :  { %517 = vmatpush.bf16.msrb.mxu0 %v996_v57 }
  0x44   :  { %530 = vmatpush.bf16.msrb.mxu1 %v1004_v58 }
  0x46   :  { %518 = vmatmul.bf16.vlgmr.msrb.gmra.mxu0 %v55_v61  ;;  %626 = vmatpush.bf16.msrb.mxu3 %v1013_v8 }
  0x47   :  { %531 = vmatmul.bf16.vlgmr.msrb.gmra.mxu1 %v56_v62 }
  0xa3   :  { %v467_v6 = vpop.f32.mrf.mxu0 }
  0xa4   :  { %v480_v7 = vpop.f32.mrf.mxu1  ;;  %v468_v17 = vadd.f32 %v1029_v15, %v467_v6 }
  0xa6   :  { %v481_v20 = vadd.f32 %v480_v7, %v468_v17 }
  0xab   :  { %v469_v9 = vpop.f32.mrf.mxu0  ;;  %v493_v12 = vpop.f32.mrf.mxu2 }
  0xac   :  { %v482_v10 = vpop.f32.mrf.mxu1  ;;  %v506_v13 = vpop.f32.mrf.mxu3  ;;  %v494_v21 = vadd.f32 %v493_v12, %v481_v20 }
  0xae   :  { %v507_v23 = vadd.f32 %v506_v13, %v494_v21 }
  0xb3   :  { %v495_v18 = vpop.f32.mrf.mxu2 }
  0xb4   :  { %v508_v19 = vpop.f32.mrf.mxu3 }
  0xbb   :  { %v545_v22 = vpop.f32.mrf.mxu2 }
  0xc3   :  { %v519_v24 = vpop.f32.mrf.mxu0  ;;  %v547_v28 = vpop.f32.mrf.mxu2 }
  0xc4   :  { %v532_v25 = vpop.f32.mrf.mxu1  ;;  %v520_v26 = vadd.f32 %v519_v24, %v507_v23 }
  0xc6   :  { %v533_v27 = vadd.f32 %v532_v25, %v520_v26 }
  0xc8   :  { %v546_v29 = vadd.f32 %v545_v22, %v533_v27 }
  0xca   :  { %v549_v30 = vmax.f32 %v546_v29, 0.0 }
  0xcb   :  { %v521_v31 = vpop.f32.mrf.mxu0 }
  0xcc   :  { %v534_v32 = vpop.f32.mrf.mxu1  ;;  %v550_v33 = vpack.c.bf16 %v549_v30, %v549_v30 }
  0xce   :  { %627 = vmatmul.bf16.vlgmr.msrb.gmra.mxu3 %v550_v33 }
 0x151   :  { %v628_v36 = vpop.f32.mrf.mxu3 }
 0x152   :  { %v629_v37 = vadd.f32 %v1030_v35, %v628_v36 }
 0x154   :  { %v632_v38 = vmax.f32 %v629_v37, 0.0 }
 0x156   :  { %v633_v39 = vpack.c.bf16 %v632_v38, %v632_v38 }
 0x158   :  { %963 = vmatmul.msk.bf16.vlgmr.msra.gmra.mxu2 %vm670_vm1, %v633_v39 }
 0x159   :  { %v630_v40 = vpop.f32.mrf.mxu3 }
 0x1db   :  { %v683_v42 = vpop.f32.mrf.mxu2 }
 0x1dc   :  { %v684_v43 = vadd.f32 %v1031_v41, %v683_v42 }
 0x1de   :  { %v688_v44 = vsel %vm687_vm2, %v684_v43, -inf }
 0x1df   :  { %689 = vmax.xlane.f32.xlu0 %v688_v44 }
 0x1e3   :  { %v685_v45 = vpop.f32.mrf.mxu2 }
 0x252   :  { %v690_v46 = vpop.xlane.xlu0 %689 }
 0x253   :  { %v691_v47 = vsub.f32 %v684_v43, %v690_v46 }
 0x255   :  { %v692_v48 = vmul.f32 1.442695, %v691_v47 }
 0x257   :  { %1032 = vpow2.f32 %v692_v48 }
 0x25d   :  { %v1033_v49 = vpop.eup %1032 }
 0x25e   :  { %v694_v50 = vsel %vm687_vm2, %v1033_v49, 0.0 }
 0x25f   :  { %695 = vadd.xlane.f32.xlu0 %v694_v50 }
 0x2d2   :  { %v696_v51 = vpop.xlane.xlu0 %695 }
 0x2d3   :  { %1034 = vlog2.f32 %v696_v51 }
 0x2d9   :  { %v1035_v52 = vpop.eup %1034 }
 0x2da   :  { %v698_v53 = vmul.f32 0.6931472, %v1035_v52 }
 0x2dc   :  { %v699_v54 = vsub.f32 %v691_v47, %v698_v53 }
 0x2de   :  { %700 = vst.msk [vmem:[#allocation5] sm:$0xff] %vm687_vm2, %v699_v54 }
 0x2df   :  { %711 = dma.vmem_to_hbm [thread:$0]  %s707_s5, 128, %s709_s25, [#allocation4]  }
 0x2e0   :  { %1086 = dma.done.wait [#allocation4], 128  }
 0x2e1   :  { %1087 = vsyncadd [#allocation4], 4294967168 }
 0x2e2   :  { %716 = vsyncpa [#allocation3], 1 }
 0x2e3   :  { %717 = vsyncpa [#allocation4], 1 }

</bundles_post_ra>
